<compile_context>
chip_gen: v5e
topology: v5e:2x2
jax: 0.10.0
libtpu: 0.0.40
codegen_flags: <defaults>
</compile_context>

<pallas_src>
import jax
import jax.numpy as jnp
import numpy as np
from jax.experimental import pallas as pl
from jax.experimental.pallas import tpu as pltpu

# ---- model hyper-parameters (match the PyTorch globals) ----
D_MODEL = 32
D_K = 16
D_V = 16
N_HEADS = 4
BATCH = 2
SEQ = 8
LN_EPS = 1e-5
NEG_INF = -1000000000.0

K_PAD = 128                       # padded contraction depth for the fused QKV matmul
F_QKV = N_HEADS * (D_K + D_K + D_V)   # 192 output columns: [Q-heads | K-heads | V-heads]


# --------------------------------------------------------------------------- #
# Kernel (single invocation, no grid)
# --------------------------------------------------------------------------- #
def mha_kernel(x_ref, wqkv_ref, wo_ref, consts_ref, out_ref, attn_ref):
    # x:      (B*S, 128)  lanes = [Q(32) | K(32) | V(32) | 1 | 0-pad]
    # wqkv:   (128, 192)  block-diag per-head weights, row 96 = biases, scale folded in Q
    # wo:     (64, 32)    output projection (head-concat ordering matches ctx layout)
    # consts: (B*S+1, 128) rows 0:B*S lanes 0:B*S = additive mask bias; row B*S = misc
    bs = x_ref.shape[0]                                    # 16
    x = x_ref[...]

    # --- fused QKV projection + bias: ONE 2-D MXU matmul (K=128, N=192) ---
    qkv = jnp.dot(x, wqkv_ref[...], preferred_element_type=jnp.float32)   # (16, 192)

    consts = consts_ref[...]
    mask_bias = consts[:bs, :bs]                           # (16, 16) pad mask + cross-batch -1e9
    misc = consts[bs:bs + 1, :]                            # (1, 128) = [bo | gamma | beta | 0]
    bo = misc[:, :D_MODEL]
    gamma = misc[:, D_MODEL:2 * D_MODEL]
    beta = misc[:, 2 * D_MODEL:3 * D_MODEL]

    hk = N_HEADS * D_K                                     # 64
    attn_blocks = []
    ctx_blocks = []
    # Unrolled per-head attention on static lane slices (H = 4, trip count known).
    for h in range(N_HEADS):
        q_h = qkv[:, h * D_K:(h + 1) * D_K]                        # (16,16), pre-scaled
        k_h = qkv[:, hk + h * D_K:hk + (h + 1) * D_K]              # (16,16)
        v_h = qkv[:, 2 * hk + h * D_V:2 * hk + (h + 1) * D_V]      # (16,16), lane-128 aligned

        # scores = q_h @ k_h^T  (contract last dim of both)
        s = jax.lax.dot_general(q_h, k_h, (((1,), (1,)), ((), ())),
                                preferred_element_type=jnp.float32)       # (16,16)
        s = s + mask_bias
        s = s - jnp.max(s, axis=-1, keepdims=True)
        p = jnp.exp(s)
        denom = jnp.sum(p, axis=-1, keepdims=True)
        # EUP reciprocal seed (off the VALU path) + one Newton step -> ~f32-exact,
        # keeps the 1e-4 verification tolerance robust.
        r = pl.reciprocal(denom, approx=True)
        r = r * (2.0 - denom * r)
        a = p * r                                                          # (16,16)
        attn_blocks.append(a)
        ctx_blocks.append(jnp.dot(a, v_h, preferred_element_type=jnp.float32))

    # One lane-dense (16, 64) attn store; cross-batch columns are exact zeros.
    attn_ref[...] = jnp.concatenate(attn_blocks, axis=-1)

    # --- output projection with the head-sum fused: one (16,64)@(64,32) matmul ---
    ctx = jnp.concatenate(ctx_blocks, axis=-1)                             # (16, 64)
    o = jnp.dot(ctx, wo_ref[...], preferred_element_type=jnp.float32) + bo  # (16, 32)

    # --- residual (original Q input) + LayerNorm (biased variance, torch semantics) ---
    y = o + x[:, :D_MODEL]
    mean = jnp.mean(y, axis=-1, keepdims=True)
    var = jnp.mean((y - mean) ** 2, axis=-1, keepdims=True)
    out_ref[...] = (y - mean) * jax.lax.rsqrt(var + LN_EPS) * gamma + beta


def _full(shape):
    nd = len(shape)
    return pl.BlockSpec(shape, lambda *_, _nd=nd: (0,) * _nd)


# --------------------------------------------------------------------------- #
# Parameter packing: pure numpy, runs ONCE outside the jitted per-call path.
# --------------------------------------------------------------------------- #
def pack_params(params):
    wq, bq, wk, bk, wv, bv, wo, bo, gamma, beta = (np.asarray(p, np.float32) for p in params)
    scale = np.float32(1.0 / np.sqrt(D_K))          # folded into the Q projection

    w_aug = np.zeros((K_PAD, F_QKV), np.float32)
    hk = N_HEADS * D_K
    # block-diagonal per-head projections (column order already matches head layout)
    w_aug[0:D_MODEL, 0:hk] = wq * scale
    w_aug[D_MODEL:2 * D_MODEL, hk:2 * hk] = wk
    w_aug[2 * D_MODEL:3 * D_MODEL, 2 * hk:] = wv
    # bias row, picked up by the constant-1 lane of xcat_aug
    w_aug[3 * D_MODEL, 0:hk] = bq[0] * scale
    w_aug[3 * D_MODEL, hk:2 * hk] = bk[0]
    w_aug[3 * D_MODEL, 2 * hk:] = bv[0]

    misc = np.zeros((1, K_PAD), np.float32)
    misc[0, 0:D_MODEL] = bo[0]
    misc[0, D_MODEL:2 * D_MODEL] = gamma[0]
    misc[0, 2 * D_MODEL:3 * D_MODEL] = beta[0]

    return jnp.asarray(w_aug), jnp.asarray(wo), jnp.asarray(misc)


# --------------------------------------------------------------------------- #
# Wrapper (same forward semantics as the PyTorch MultiHeadAttention module)
# --------------------------------------------------------------------------- #
def multi_head_attention(Q, K, V, attn_mask, w_aug, wo, misc):
    B, S, D = Q.shape
    BS = B * S

    # activations: [Q | K | V | 1 | 0-pad] -> (B*S, 128); batch/seq folded into sublanes
    ones = jnp.ones((BS, 1), jnp.float32)
    zpad = jnp.zeros((BS, K_PAD - 3 * D - 1), jnp.float32)
    xcat = jnp.concatenate([Q.reshape(BS, D), K.reshape(BS, D), V.reshape(BS, D),
                            ones, zpad], axis=-1)

    # Additive mask bias over all B*S keys: padding mask within a batch, -1e9 for
    # cross-batch entries so every batch/head shares one (16-key) softmax row; masked
    # keys underflow to exactly 0 probability after max-subtraction.
    pad_bias = jnp.where(attn_mask != 0, jnp.float32(NEG_INF), jnp.float32(0.0))   # (B,S,S)
    same = jnp.arange(B)[:, None] == jnp.arange(B)[None, :]                        # (B,B)
    bias = jnp.where(same[:, None, :, None], pad_bias[:, :, None, :],
                     jnp.float32(NEG_INF))                                         # (B,S,B,S)
    mask16 = bias.reshape(BS, BS)

    # consts slab (B*S + 1, 128): rows 0:16 = mask bias (lane-padded), row 16 = misc
    consts = jnp.concatenate([jnp.pad(mask16, ((0, 0), (0, K_PAD - BS))), misc], axis=0)

    out_flat, attn_flat = pl.pallas_call(
        mha_kernel,
        out_shape=[
            jax.ShapeDtypeStruct((BS, D), jnp.float32),
            jax.ShapeDtypeStruct((BS, N_HEADS * BS), jnp.float32),
        ],
        in_specs=[
            _full(xcat.shape),      # (16, 128)
            _full(w_aug.shape),     # (128, 192)
            _full(wo.shape),        # (64, 32)
            _full(consts.shape),    # (17, 128)
        ],
        out_specs=[
            _full((BS, D)),
            _full((BS, N_HEADS * BS)),
        ],
        compiler_params=pltpu.CompilerParams(vmem_limit_bytes=8 * 1024 * 1024),
    )(xcat, w_aug, wo, consts)

    out = out_flat.reshape(B, S, D)
    # attn_flat[q_row, h*BS + k_row]; take the per-batch diagonal blocks -> (B, H, S, S).
    idx = jnp.arange(B)
    attn = attn_flat.reshape(B, S, N_HEADS, B, S)[idx, :, :, idx, :]   # (B, S, H, S)
    attn = attn.transpose(0, 2, 1, 3)                                  # (B, H, S, S)
    return out, attn


# --------------------------------------------------------------------------- #
# Pure-JAX reference (mirrors the PyTorch module exactly) + test harness
# --------------------------------------------------------------------------- #
def reference(Q, K, V, attn_mask, params):
    (wq, bq, wk, bk, wv, bv, wo, bo, gamma, beta) = params
    B, S, D = Q.shape
    q = (Q @ wq + bq).reshape(B, S, N_HEADS, D_K).transpose(0, 2, 1, 3)
    k = (K @ wk + bk).reshape(B, S, N_HEADS, D_K).transpose(0, 2, 1, 3)
    v = (V @ wv + bv).reshape(B, S, N_HEADS, D_V).transpose(0, 2, 1, 3)
    scores = jnp.einsum("bhqd,bhkd->bhqk", q, k) / np.sqrt(D_K)
    scores = jnp.where(attn_mask[:, None, :, :] != 0, NEG_INF, scores)
    attn = jax.nn.softmax(scores, axis=-1)
    ctx = jnp.einsum("bhqk,bhkd->bhqd", attn, v).transpose(0, 2, 1, 3)
    ctx = ctx.reshape(B, S, N_HEADS * D_V)
    o = ctx @ wo + bo
    y = o + Q
    m = jnp.mean(y, axis=-1, keepdims=True)
    var = jnp.mean((y - m) ** 2, axis=-1, keepdims=True)
    out = (y - m) * jax.lax.rsqrt(var + LN_EPS) * gamma + beta
    return out, attn


def make_params(key):
    ks = jax.random.split(key, 8)

    def lin_w(kw, fan_in, fan_out):
        bound = 1.0 / np.sqrt(fan_in)
        return jax.random.uniform(kw, (fan_in, fan_out), jnp.float32, -bound, bound)

    wq = lin_w(ks[0], D_MODEL, N_HEADS * D_K)
    bq = jax.random.uniform(ks[1], (1, N_HEADS * D_K), jnp.float32, -0.1, 0.1)
    wk = lin_w(ks[2], D_MODEL, N_HEADS * D_K)
    bk = jax.random.uniform(ks[3], (1, N_HEADS * D_K), jnp.float32, -0.1, 0.1)
    wv = lin_w(ks[4], D_MODEL, N_HEADS * D_V)
    bv = jax.random.uniform(ks[5], (1, N_HEADS * D_V), jnp.float32, -0.1, 0.1)
    wo = lin_w(ks[6], N_HEADS * D_V, D_MODEL)
    bo = jax.random.uniform(ks[7], (1, D_MODEL), jnp.float32, -0.1, 0.1)
    gamma = jnp.ones((1, D_MODEL), jnp.float32)
    beta = jnp.zeros((1, D_MODEL), jnp.float32)
    return (wq, bq, wk, bk, wv, bv, wo, bo, gamma, beta)


if __name__ == "__main__":
    key = jax.random.PRNGKey(0)
    kx, kp = jax.random.split(key, 2)

    x = jax.random.normal(kx, (BATCH, SEQ, D_MODEL), jnp.float32)
    # Self-attention padding mask: mask out the last 2 key positions of batch 1.
    mask_np = np.zeros((BATCH, SEQ, SEQ), np.int32)
    mask_np[1, :, SEQ - 2:] = 1
    mask = jnp.asarray(mask_np)

    params = make_params(kp)
    w_aug, wo_packed, misc = pack_params(params)     # numpy packing, once, outside jit

    mha = jax.jit(multi_head_attention)
    out, attn = mha(x, x, x, mask, w_aug, wo_packed, misc)
    out = jax.block_until_ready(out)
    attn = jax.block_until_ready(attn)

    ref_out, ref_attn = reference(x, x, x, mask, params)
    np.testing.assert_allclose(np.asarray(out), np.asarray(ref_out), rtol=1e-4, atol=1e-4)
    np.testing.assert_allclose(np.asarray(attn), np.asarray(ref_attn), rtol=1e-4, atol=1e-4)

    print("KERNEL_OK")
</pallas_src>

<mosaic_0001>
module attributes {stable_mosaic.version = 11 : i64} {
  func.func @mha_kernel(%arg0: memref<16x128xf32, #tpu.memory_space<vmem>>, %arg1: memref<128x192xf32, #tpu.memory_space<vmem>>, %arg2: memref<64x32xf32, #tpu.memory_space<vmem>>, %arg3: memref<17x128xf32, #tpu.memory_space<vmem>>, %arg4: memref<16x32xf32, #tpu.memory_space<vmem>>, %arg5: memref<16x64xf32, #tpu.memory_space<vmem>>) attributes {dimension_semantics = [], scalar_prefetch = 0 : i64, scratch_operands = 0 : i64, tpu.core_type = #tpu.core_type<tc>} {
    %c0 = arith.constant 0 : index
    %c0_0 = arith.constant 0 : index
    %0 = vector.load %arg0[%c0, %c0_0] : memref<16x128xf32, #tpu.memory_space<vmem>>, vector<16x128xf32>
    %c0_1 = arith.constant 0 : index
    %c0_2 = arith.constant 0 : index
    %1 = vector.load %arg1[%c0_1, %c0_2] : memref<128x192xf32, #tpu.memory_space<vmem>>, vector<128x192xf32>
    %cst = arith.constant dense<0.000000e+00> : vector<16x192xf32>
    %2 = tpu.matmul %0, %1, %cst {dimension_numbers = #tpu.dot_dimension_numbers<[1], [0], [0], [1], [0, 0, 1, 1], [], []>} : vector<16x128xf32>, vector<128x192xf32>, vector<16x192xf32> -> vector<16x192xf32>
    %c0_3 = arith.constant 0 : index
    %c0_4 = arith.constant 0 : index
    %3 = vector.load %arg3[%c0_3, %c0_4] : memref<17x128xf32, #tpu.memory_space<vmem>>, vector<17x128xf32>
    %4 = vector.extract_strided_slice %3 {offsets = [0, 0], sizes = [16, 16], strides = [1, 1]} : vector<17x128xf32> to vector<16x16xf32>
    %5 = vector.extract_strided_slice %3 {offsets = [16, 0], sizes = [1, 128], strides = [1, 1]} : vector<17x128xf32> to vector<1x128xf32>
    %6 = vector.extract_strided_slice %5 {offsets = [0, 0], sizes = [1, 32], strides = [1, 1]} : vector<1x128xf32> to vector<1x32xf32>
    %7 = vector.extract_strided_slice %5 {offsets = [0, 32], sizes = [1, 32], strides = [1, 1]} : vector<1x128xf32> to vector<1x32xf32>
    %8 = vector.extract_strided_slice %5 {offsets = [0, 64], sizes = [1, 32], strides = [1, 1]} : vector<1x128xf32> to vector<1x32xf32>
    %9 = vector.extract_strided_slice %2 {offsets = [0, 0], sizes = [16, 16], strides = [1, 1]} : vector<16x192xf32> to vector<16x16xf32>
    %10 = vector.extract_strided_slice %2 {offsets = [0, 64], sizes = [16, 16], strides = [1, 1]} : vector<16x192xf32> to vector<16x16xf32>
    %11 = vector.extract_strided_slice %2 {offsets = [0, 128], sizes = [16, 16], strides = [1, 1]} : vector<16x192xf32> to vector<16x16xf32>
    %cst_5 = arith.constant dense<0.000000e+00> : vector<16x16xf32>
    %12 = tpu.matmul %9, %10, %cst_5 {dimension_numbers = #tpu.dot_dimension_numbers<[1], [1], [0], [0], [0, 0, 1, 0], [], []>} : vector<16x16xf32>, vector<16x16xf32>, vector<16x16xf32> -> vector<16x16xf32>
    %13 = arith.addf %12, %4 : vector<16x16xf32>
    %cst_6 = arith.constant dense<0xFF800000> : vector<16xf32>
    %14 = vector.multi_reduction <maximumf>, %13, %cst_6 [1] : vector<16x16xf32> to vector<16xf32>
    %15 = vector.shape_cast %14 : vector<16xf32> to vector<16x1xf32>
    %16 = vector.broadcast %15 : vector<16x1xf32> to vector<16x16xf32>
    %17 = arith.subf %13, %16 : vector<16x16xf32>
    %18 = math.exp %17 : vector<16x16xf32>
    %cst_7 = arith.constant dense<0.000000e+00> : vector<16xf32>
    %19 = vector.multi_reduction <add>, %18, %cst_7 [1] : vector<16x16xf32> to vector<16xf32>
    %20 = vector.shape_cast %19 : vector<16xf32> to vector<16x1xf32>
    %21 = tpu.reciprocal %20 {approx = true} : vector<16x1xf32> -> vector<16x1xf32>
    %22 = arith.mulf %20, %21 : vector<16x1xf32>
    %cst_8 = arith.constant 2.000000e+00 : f32
    %23 = vector.broadcast %cst_8 : f32 to vector<16x1xf32>
    %24 = arith.subf %23, %22 : vector<16x1xf32>
    %25 = arith.mulf %21, %24 : vector<16x1xf32>
    %26 = vector.broadcast %25 : vector<16x1xf32> to vector<16x16xf32>
    %27 = arith.mulf %18, %26 : vector<16x16xf32>
    %cst_9 = arith.constant dense<0.000000e+00> : vector<16x16xf32>
    %28 = tpu.matmul %27, %11, %cst_9 {dimension_numbers = #tpu.dot_dimension_numbers<[1], [0], [0], [1], [0, 0, 1, 1], [], []>} : vector<16x16xf32>, vector<16x16xf32>, vector<16x16xf32> -> vector<16x16xf32>
    %29 = vector.extract_strided_slice %2 {offsets = [0, 16], sizes = [16, 16], strides = [1, 1]} : vector<16x192xf32> to vector<16x16xf32>
    %30 = vector.extract_strided_slice %2 {offsets = [0, 80], sizes = [16, 16], strides = [1, 1]} : vector<16x192xf32> to vector<16x16xf32>
    %31 = vector.extract_strided_slice %2 {offsets = [0, 144], sizes = [16, 16], strides = [1, 1]} : vector<16x192xf32> to vector<16x16xf32>
    %cst_10 = arith.constant dense<0.000000e+00> : vector<16x16xf32>
    %32 = tpu.matmul %29, %30, %cst_10 {dimension_numbers = #tpu.dot_dimension_numbers<[1], [1], [0], [0], [0, 0, 1, 0], [], []>} : vector<16x16xf32>, vector<16x16xf32>, vector<16x16xf32> -> vector<16x16xf32>
    %33 = arith.addf %32, %4 : vector<16x16xf32>
    %cst_11 = arith.constant dense<0xFF800000> : vector<16xf32>
    %34 = vector.multi_reduction <maximumf>, %33, %cst_11 [1] : vector<16x16xf32> to vector<16xf32>
    %35 = vector.shape_cast %34 : vector<16xf32> to vector<16x1xf32>
    %36 = vector.broadcast %35 : vector<16x1xf32> to vector<16x16xf32>
    %37 = arith.subf %33, %36 : vector<16x16xf32>
    %38 = math.exp %37 : vector<16x16xf32>
    %cst_12 = arith.constant dense<0.000000e+00> : vector<16xf32>
    %39 = vector.multi_reduction <add>, %38, %cst_12 [1] : vector<16x16xf32> to vector<16xf32>
    %40 = vector.shape_cast %39 : vector<16xf32> to vector<16x1xf32>
    %41 = tpu.reciprocal %40 {approx = true} : vector<16x1xf32> -> vector<16x1xf32>
    %42 = arith.mulf %40, %41 : vector<16x1xf32>
    %cst_13 = arith.constant 2.000000e+00 : f32
    %43 = vector.broadcast %cst_13 : f32 to vector<16x1xf32>
    %44 = arith.subf %43, %42 : vector<16x1xf32>
    %45 = arith.mulf %41, %44 : vector<16x1xf32>
    %46 = vector.broadcast %45 : vector<16x1xf32> to vector<16x16xf32>
    %47 = arith.mulf %38, %46 : vector<16x16xf32>
    %cst_14 = arith.constant dense<0.000000e+00> : vector<16x16xf32>
    %48 = tpu.matmul %47, %31, %cst_14 {dimension_numbers = #tpu.dot_dimension_numbers<[1], [0], [0], [1], [0, 0, 1, 1], [], []>} : vector<16x16xf32>, vector<16x16xf32>, vector<16x16xf32> -> vector<16x16xf32>
    %49 = vector.extract_strided_slice %2 {offsets = [0, 32], sizes = [16, 16], strides = [1, 1]} : vector<16x192xf32> to vector<16x16xf32>
    %50 = vector.extract_strided_slice %2 {offsets = [0, 96], sizes = [16, 16], strides = [1, 1]} : vector<16x192xf32> to vector<16x16xf32>
    %51 = vector.extract_strided_slice %2 {offsets = [0, 160], sizes = [16, 16], strides = [1, 1]} : vector<16x192xf32> to vector<16x16xf32>
    %cst_15 = arith.constant dense<0.000000e+00> : vector<16x16xf32>
    %52 = tpu.matmul %49, %50, %cst_15 {dimension_numbers = #tpu.dot_dimension_numbers<[1], [1], [0], [0], [0, 0, 1, 0], [], []>} : vector<16x16xf32>, vector<16x16xf32>, vector<16x16xf32> -> vector<16x16xf32>
    %53 = arith.addf %52, %4 : vector<16x16xf32>
    %cst_16 = arith.constant dense<0xFF800000> : vector<16xf32>
    %54 = vector.multi_reduction <maximumf>, %53, %cst_16 [1] : vector<16x16xf32> to vector<16xf32>
    %55 = vector.shape_cast %54 : vector<16xf32> to vector<16x1xf32>
    %56 = vector.broadcast %55 : vector<16x1xf32> to vector<16x16xf32>
    %57 = arith.subf %53, %56 : vector<16x16xf32>
    %58 = math.exp %57 : vector<16x16xf32>
    %cst_17 = arith.constant dense<0.000000e+00> : vector<16xf32>
    %59 = vector.multi_reduction <add>, %58, %cst_17 [1] : vector<16x16xf32> to vector<16xf32>
    %60 = vector.shape_cast %59 : vector<16xf32> to vector<16x1xf32>
    %61 = tpu.reciprocal %60 {approx = true} : vector<16x1xf32> -> vector<16x1xf32>
    %62 = arith.mulf %60, %61 : vector<16x1xf32>
    %cst_18 = arith.constant 2.000000e+00 : f32
    %63 = vector.broadcast %cst_18 : f32 to vector<16x1xf32>
    %64 = arith.subf %63, %62 : vector<16x1xf32>
    %65 = arith.mulf %61, %64 : vector<16x1xf32>
    %66 = vector.broadcast %65 : vector<16x1xf32> to vector<16x16xf32>
    %67 = arith.mulf %58, %66 : vector<16x16xf32>
    %cst_19 = arith.constant dense<0.000000e+00> : vector<16x16xf32>
    %68 = tpu.matmul %67, %51, %cst_19 {dimension_numbers = #tpu.dot_dimension_numbers<[1], [0], [0], [1], [0, 0, 1, 1], [], []>} : vector<16x16xf32>, vector<16x16xf32>, vector<16x16xf32> -> vector<16x16xf32>
    %69 = vector.extract_strided_slice %2 {offsets = [0, 48], sizes = [16, 16], strides = [1, 1]} : vector<16x192xf32> to vector<16x16xf32>
    %70 = vector.extract_strided_slice %2 {offsets = [0, 112], sizes = [16, 16], strides = [1, 1]} : vector<16x192xf32> to vector<16x16xf32>
    %71 = vector.extract_strided_slice %2 {offsets = [0, 176], sizes = [16, 16], strides = [1, 1]} : vector<16x192xf32> to vector<16x16xf32>
    %cst_20 = arith.constant dense<0.000000e+00> : vector<16x16xf32>
    %72 = tpu.matmul %69, %70, %cst_20 {dimension_numbers = #tpu.dot_dimension_numbers<[1], [1], [0], [0], [0, 0, 1, 0], [], []>} : vector<16x16xf32>, vector<16x16xf32>, vector<16x16xf32> -> vector<16x16xf32>
    %73 = arith.addf %72, %4 : vector<16x16xf32>
    %cst_21 = arith.constant dense<0xFF800000> : vector<16xf32>
    %74 = vector.multi_reduction <maximumf>, %73, %cst_21 [1] : vector<16x16xf32> to vector<16xf32>
    %75 = vector.shape_cast %74 : vector<16xf32> to vector<16x1xf32>
    %76 = vector.broadcast %75 : vector<16x1xf32> to vector<16x16xf32>
    %77 = arith.subf %73, %76 : vector<16x16xf32>
    %78 = math.exp %77 : vector<16x16xf32>
    %cst_22 = arith.constant dense<0.000000e+00> : vector<16xf32>
    %79 = vector.multi_reduction <add>, %78, %cst_22 [1] : vector<16x16xf32> to vector<16xf32>
    %80 = vector.shape_cast %79 : vector<16xf32> to vector<16x1xf32>
    %81 = tpu.reciprocal %80 {approx = true} : vector<16x1xf32> -> vector<16x1xf32>
    %82 = arith.mulf %80, %81 : vector<16x1xf32>
    %cst_23 = arith.constant 2.000000e+00 : f32
    %83 = vector.broadcast %cst_23 : f32 to vector<16x1xf32>
    %84 = arith.subf %83, %82 : vector<16x1xf32>
    %85 = arith.mulf %81, %84 : vector<16x1xf32>
    %86 = vector.broadcast %85 : vector<16x1xf32> to vector<16x16xf32>
    %87 = arith.mulf %78, %86 : vector<16x16xf32>
    %cst_24 = arith.constant dense<0.000000e+00> : vector<16x16xf32>
    %88 = tpu.matmul %87, %71, %cst_24 {dimension_numbers = #tpu.dot_dimension_numbers<[1], [0], [0], [1], [0, 0, 1, 1], [], []>} : vector<16x16xf32>, vector<16x16xf32>, vector<16x16xf32> -> vector<16x16xf32>
    %89 = tpu.concatenate %27, %47, %67, %87 in 1 : vector<16x16xf32>, vector<16x16xf32>, vector<16x16xf32>, vector<16x16xf32> -> vector<16x64xf32>
    %c0_25 = arith.constant 0 : index
    %c0_26 = arith.constant 0 : index
    %90 = vector.load %arg5[%c0_25, %c0_26] : memref<16x64xf32, #tpu.memory_space<vmem>>, vector<16x64xf32>
    tpu.vector_store %arg5[%c0_25, %c0_26], %89 {strides = array<i32>} : memref<16x64xf32, #tpu.memory_space<vmem>>, vector<16x64xf32>,
    %91 = tpu.concatenate %28, %48, %68, %88 in 1 : vector<16x16xf32>, vector<16x16xf32>, vector<16x16xf32>, vector<16x16xf32> -> vector<16x64xf32>
    %c0_27 = arith.constant 0 : index
    %c0_28 = arith.constant 0 : index
    %92 = vector.load %arg2[%c0_27, %c0_28] : memref<64x32xf32, #tpu.memory_space<vmem>>, vector<64x32xf32>
    %cst_29 = arith.constant dense<0.000000e+00> : vector<16x32xf32>
    %93 = tpu.matmul %91, %92, %cst_29 {dimension_numbers = #tpu.dot_dimension_numbers<[1], [0], [0], [1], [0, 0, 1, 1], [], []>} : vector<16x64xf32>, vector<64x32xf32>, vector<16x32xf32> -> vector<16x32xf32>
    %94 = vector.broadcast %6 : vector<1x32xf32> to vector<16x32xf32>
    %95 = arith.addf %93, %94 : vector<16x32xf32>
    %96 = vector.extract_strided_slice %0 {offsets = [0, 0], sizes = [16, 32], strides = [1, 1]} : vector<16x128xf32> to vector<16x32xf32>
    %97 = arith.addf %95, %96 : vector<16x32xf32>
    %cst_30 = arith.constant dense<0.000000e+00> : vector<16xf32>
    %98 = vector.multi_reduction <add>, %97, %cst_30 [1] : vector<16x32xf32> to vector<16xf32>
    %99 = vector.shape_cast %98 : vector<16xf32> to vector<16x1xf32>
    %cst_31 = arith.constant 3.200000e+01 : f32
    %100 = vector.broadcast %cst_31 : f32 to vector<16x1xf32>
    %101 = arith.divf %99, %100 : vector<16x1xf32>
    %102 = vector.broadcast %101 : vector<16x1xf32> to vector<16x32xf32>
    %103 = arith.subf %97, %102 : vector<16x32xf32>
    %104 = arith.mulf %103, %103 : vector<16x32xf32>
    %cst_32 = arith.constant dense<0.000000e+00> : vector<16xf32>
    %105 = vector.multi_reduction <add>, %104, %cst_32 [1] : vector<16x32xf32> to vector<16xf32>
    %106 = vector.shape_cast %105 : vector<16xf32> to vector<16x1xf32>
    %cst_33 = arith.constant 3.200000e+01 : f32
    %107 = vector.broadcast %cst_33 : f32 to vector<16x1xf32>
    %108 = arith.divf %106, %107 : vector<16x1xf32>
    %109 = vector.broadcast %101 : vector<16x1xf32> to vector<16x32xf32>
    %110 = arith.subf %97, %109 : vector<16x32xf32>
    %cst_34 = arith.constant 9.99999974E-6 : f32
    %111 = vector.broadcast %cst_34 : f32 to vector<16x1xf32>
    %112 = arith.addf %108, %111 : vector<16x1xf32>
    %113 = math.rsqrt %112 : vector<16x1xf32>
    %114 = vector.broadcast %113 : vector<16x1xf32> to vector<16x32xf32>
    %115 = arith.mulf %110, %114 : vector<16x32xf32>
    %116 = vector.broadcast %7 : vector<1x32xf32> to vector<16x32xf32>
    %117 = arith.mulf %115, %116 : vector<16x32xf32>
    %118 = vector.broadcast %8 : vector<1x32xf32> to vector<16x32xf32>
    %119 = arith.addf %117, %118 : vector<16x32xf32>
    %c0_35 = arith.constant 0 : index
    %c0_36 = arith.constant 0 : index
    %120 = vector.load %arg4[%c0_35, %c0_36] : memref<16x32xf32, #tpu.memory_space<vmem>>, vector<16x32xf32>
    tpu.vector_store %arg4[%c0_35, %c0_36], %119 {strides = array<i32>} : memref<16x32xf32, #tpu.memory_space<vmem>>, vector<16x32xf32>,
    return
  }
}

</mosaic_0001>

<bundles_post_ra>
// kernel: multi_head_attention.1
= control target key start
LH: loop header
LB: loop body
LE: loop exit
PB: predicated region body
PF: predicated region fallthrough
CT: control target
= control target key end

     0   :  { %s1178_s0 = inlined_call_operand.vmem [shape: f32[16,128], index: 0, kind: input, shape index: {}]   ;;  %s1179_s1 = inlined_call_operand.vmem [shape: f32[128,192], index: 1, kind: input, shape index: {}]   ;;  %s1180_s2 = inlined_call_operand.vmem [shape: f32[64,32], index: 2, kind: input, shape index: {}]   ;;  %s1181_s3 = inlined_call_operand.vmem [shape: f32[17,128], index: 3, kind: input, shape index: {}]   ;;  %s1182_s4 = inlined_call_operand.hbm [shape: f32[16,32], index: 4, kind: output, shape index: {0}]   ;;  %s1183_s5 = inlined_call_operand.vmem [shape: f32[16,64], index: 5, kind: output, shape index: {1}]  }
   0x1   :  { %v52_v0 = vld [vmem:[%s1179_s1 + $0xf0] sm:$0xff]  ;;  %v50_v1 = vld [vmem:[%s1179_s1 + $0xe0] sm:$0xff] }
   0x2   :  { %54 = vmatpush.msra.mxu0 %v52_v0  ;;  %v48_v2 = vld [vmem:[%s1179_s1 + $0xd0] sm:$0xff]  ;;  %v46_v3 = vld [vmem:[%s1179_s1 + $0xc0] sm:$0xff] }
   0x3   :  { %v44_v4 = vld [vmem:[%s1179_s1 + $0xb0] sm:$0xff] }
   0x4   :  { %55 = vmatpush.msra.mxu0 %v50_v1 }
   0x6   :  { %56 = vmatpush.msra.mxu0 %v48_v2 }
   0x7   :  { %11 = vsyncpa [#allocation3], 0  ;;  %v42_v5 = vld [vmem:[%s1179_s1 + $0xa0] sm:$0xff]  ;;  %v53_v6 = vld [vmem:[%s1179_s1 + $0xf8] sm:$0xff]  ;;  %s810_s11 = smov 48   ;;  %s813_s12 = smov 112  }
   0x8   :  { %57 = vmatpush.msra.mxu0 %v46_v3  ;;  %v51_v7 = vld [vmem:[%s1179_s1 + $0xe8] sm:$0xff]  ;;  %77 = vmatpush.msra.mxu1 %v53_v6  ;;  %v40_v8 = vld [vmem:[%s1179_s1 + $0x90] sm:$0xff]  ;;  %v49_v9 = vld [vmem:[%s1179_s1 + $0xd8] sm:$0xff]  ;;  %s814_s13 = smov 96   ;;  %s815_s14 = smov 16   ;;  %vm109_vm0 = vcmask 130048  }
   0x9   :  { %v38_v10 = vld [vmem:[%s1179_s1 + $0x80] sm:$0xff]  ;;  %v47_v11 = vld [vmem:[%s1179_s1 + $0xc8] sm:$0xff]  ;;  %v36_v12 = vld [vmem:[%s1179_s1 + $0x70] sm:$0xff]  ;;  %s816_s15 = smov 80   ;;  %vm526_vm1 = vcmask 261120   ;;  %vm529_vm2 = vcmask 392192  }
   0xa   :  { %58 = vmatpush.msra.mxu0 %v44_v4  ;;  %78 = vmatpush.msra.mxu1 %v51_v7  ;;  %v45_v13 = vld [vmem:[%s1179_s1 + $0xb8] sm:$0xff]  ;;  %v34_v14 = vld [vmem:[%s1179_s1 + $0x60] sm:$0xff]  ;;  %v43_v15 = vld [vmem:[%s1179_s1 + $0xa8] sm:$0xff]  ;;  %vm532_vm3 = vcmask 523264   ;;  %s819_s18 = smov 128   ;;  %s820_s19 = smov 8  }
   0xb   :  { %v32_v16 = vld [vmem:[%s1179_s1 + $0x50] sm:$0xff]  ;;  %v41_v17 = vld [vmem:[%s1179_s1 + $0x98] sm:$0xff]  ;;  %v30_v18 = vld [vmem:[%s1179_s1 + $0x40] sm:$0xff] }
   0xc   :  { %59 = vmatpush.msra.mxu0 %v42_v5  ;;  %79 = vmatpush.msra.mxu1 %v49_v9  ;;  %v39_v19 = vld [vmem:[%s1179_s1 + $0x88] sm:$0xff]  ;;  %v28_v20 = vld [vmem:[%s1179_s1 + $0x30] sm:$0xff]  ;;  %v37_v21 = vld [vmem:[%s1179_s1 + $0x78] sm:$0xff] }
   0xd   :  { %v26_v22 = vld [vmem:[%s1179_s1 + $0x20] sm:$0xff]  ;;  %v35_v23 = vld [vmem:[%s1179_s1 + $0x68] sm:$0xff]  ;;  %v24_v24 = vld [vmem:[%s1179_s1 + $0x10] sm:$0xff] }
   0xe   :  { %60 = vmatpush.msra.mxu0 %v40_v8  ;;  %80 = vmatpush.msra.mxu1 %v47_v11  ;;  %v33_v25 = vld [vmem:[%s1179_s1 + $0x58] sm:$0xff]  ;;  %v22_v26 = vld [vmem:[%s1179_s1] sm:$0xff]  ;;  %v31_v27 = vld [vmem:[%s1179_s1 + $0x48] sm:$0xff] }
   0xf   :  { %v938_v28 = vld [vmem:[%s1178_s0] sm:$0xff]  ;;  %v29_v29 = vld [vmem:[%s1179_s1 + $0x38] sm:$0xff]  ;;  %v27_v30 = vld [vmem:[%s1179_s1 + $0x28] sm:$0xff] }
  0x10   :  { %61 = vmatpush.msra.mxu0 %v38_v10  ;;  %81 = vmatpush.msra.mxu1 %v45_v13  ;;  %v25_v31 = vld [vmem:[%s1179_s1 + $0x18] sm:$0xff]  ;;  %v23_v32 = vld [vmem:[%s1179_s1 + $0x8] sm:$0xff]  ;;  %s811_s1 = smov 64   ;;  %v1009_v50 = vld [vmem:[%s1181_s3] sm:$0xff] }
  0x11   :  { %v956_v33 = vld [vmem:[%s1178_s0 + $0x8] sm:$0xff]  ;;  %s812_s0 = smov 32  }
  0x12   :  { %62 = vmatpush.msra.mxu0 %v36_v12  ;;  %82 = vmatpush.msra.mxu1 %v43_v15  ;;  %v1016_v54 = vld [vmem:[%s1181_s3 + $0x8] sm:$0xff] }
  0x14   :  { %63 = vmatpush.msra.mxu0 %v34_v14  ;;  %83 = vmatpush.msra.mxu1 %v41_v17 }
  0x16   :  { %64 = vmatpush.msra.mxu0 %v32_v16  ;;  %84 = vmatpush.msra.mxu1 %v39_v19 }
  0x18   :  { %65 = vmatpush.msra.mxu0 %v30_v18  ;;  %85 = vmatpush.msra.mxu1 %v37_v21 }
  0x1a   :  { %66 = vmatpush.msra.mxu0 %v28_v20  ;;  %86 = vmatpush.msra.mxu1 %v35_v23 }
  0x1c   :  { %67 = vmatpush.msra.mxu0 %v26_v22  ;;  %87 = vmatpush.msra.mxu1 %v33_v25 }
  0x1e   :  { %68 = vmatpush.msra.mxu0 %v24_v24  ;;  %88 = vmatpush.msra.mxu1 %v31_v27 }
  0x20   :  { %69 = vmatpush.msra.mxu0 %v22_v26  ;;  %89 = vmatpush.msra.mxu1 %v29_v29 }
  0x21   :  { %70 = vmatmul.f32.vlgmr.msra.gmra.mxu0 %v938_v28 }
  0x22   :  { %90 = vmatpush.msra.mxu1 %v27_v30 }
  0x24   :  { %91 = vmatpush.msra.mxu1 %v25_v31 }
  0x26   :  { %92 = vmatpush.msra.mxu1 %v23_v32 }
  0x27   :  { %93 = vmatmul.f32.vlgmr.msra.gmra.mxu1 %v938_v28 }
  0x29   :  { %73 = vmatmul.f32.gmra.mxu0 %v956_v33 }
  0x2f   :  { %96 = vmatmul.f32.gmra.mxu1 %v956_v33 }
  0x9e   :  { %v71_v34 = vpop.f32.mrf.mxu0 }
  0xa4   :  { %v969_v36 = vpop.f32.mrf.mxu1 }
  0xa6   :  { %v961_v35 = vpop.f32.mrf.mxu0 }
  0xa7   :  { %204 = vrot.lane.b32.xlu2 %v961_v35, %s810_s11  ;;  %107 = vrot.lane.b32.xlu0 %v961_v35, %s811_s1 }
  0xac   :  { %v974_v37 = vpop.f32.mrf.mxu1 }
  0xad   :  { %717 = vmatpush.msra.mxu3 %v974_v37  ;;  %v1033_v7 = vpack.i.bf16 %v969_v36, %v974_v37 }
  0xaf   :  { %202 = vrot.lane.b32.xlu2 %v71_v34, %s810_s11  ;;  %105 = vrot.lane.b32.xlu0 %v71_v34, %s811_s1 }
  0xb0   :  { %718 = vmatpush.msra.mxu3 %v969_v36 }
  0xb7   :  { %308 = vrot.lane.b32.xlu2 %v961_v35, %s812_s0  ;;  %198 = vrot.lane.b32.xlu0 %v71_v34, %s813_s12 }
  0xbf   :  { %302 = vrot.lane.b32.xlu2 %v71_v34, %s814_s13  ;;  %306 = vrot.lane.b32.xlu0 %v71_v34, %s812_s0 }
  0xc7   :  { %304 = vrot.lane.b32.xlu2 %v961_v35, %s814_s13  ;;  %410 = vrot.lane.b32.xlu0 %v961_v35, %s815_s14 }
  0xcf   :  { %404 = vrot.lane.b32.xlu2 %v71_v34, %s816_s15  ;;  %408 = vrot.lane.b32.xlu0 %v71_v34, %s815_s14 }
 0x101   :  { %v205_v38 = vpop.permute.xlu2 %204 }
 0x102   :  { %697 = vmatpush.xpose.msk.msrb.mxu3 %vm109_vm0, %v205_v38 }
 0x109   :  { %v203_v39 = vpop.permute.xlu2 %202 }
 0x10a   :  { %698 = vmatpush.xpose.msk.msrb.mxu3 %vm109_vm0, %v203_v39 }
 0x111   :  { %v992_v42 = vpop.permute.xlu2 %308 }
 0x119   :  { %v108_v40 = vpop.permute.xlu0 %107  ;;  %v999_v44 = vpop.permute.xlu2 %302 }
 0x11a   :  { %691 = vmatpush.xpose.msk.msra.mxu2 %vm109_vm0, %v108_v40 }
 0x121   :  { %v106_v41 = vpop.permute.xlu0 %105  ;;  %v1001_v47 = vpop.permute.xlu2 %304 }
 0x122   :  { %692 = vmatpush.xpose.msk.msra.mxu2 %vm109_vm0, %v106_v41 }
 0x125   :  { %693 = vmatmul.msk.f32.vlgmr.msra.gmra.mxu2 %vm109_vm0, %v71_v34 }
 0x126   :  { %189 = vmatpush.msrb.mxu2 %v974_v37 }
 0x128   :  { %190 = vmatpush.msrb.mxu2 %v969_v36 }
 0x129   :  { %v995_v43 = vpop.permute.xlu0 %198  ;;  %v405_v49 = vpop.permute.xlu2 %404 }
 0x12d   :  { %694 = vmatmul.msk.f32.gmra.mxu2 %vm109_vm0, %v961_v35 }
 0x131   :  { %v307_v45 = vpop.permute.xlu0 %306 }
 0x139   :  { %v411_v46 = vpop.permute.xlu0 %410 }
 0x13a   :  { %709 = vmatpush.xpose.msk.msrb.mxu0 %vm109_vm0, %v411_v46 }
 0x141   :  { %v409_v48 = vpop.permute.xlu0 %408 }
 0x142   :  { %710 = vmatpush.xpose.msk.msrb.mxu0 %vm109_vm0, %v409_v48 }
 0x145   :  { %711 = vmatmul.msk.f32.vlgmr.msrb.gmra.mxu0 %vm109_vm0, %v405_v49 }
 0x1a8   :  { %v135_v51 = vpop.f32.mrf.mxu2 }
 0x1a9   :  { %v136_v52 = vadd.f32 %v135_v51, %v1009_v50 }
 0x1ab   :  { %v141_v53 = vsel %vm109_vm0, %v136_v52, -inf }
 0x1ac   :  { %142 = vmax.xlane.f32.xlu0 %v141_v53 }
 0x1b0   :  { %v138_v55 = vpop.f32.mrf.mxu2 }
 0x1b1   :  { %v139_v56 = vadd.f32 %v138_v55, %v1016_v54 }
 0x1b3   :  { %v144_v57 = vsel %vm109_vm0, %v139_v56, -inf }
 0x1b4   :  { %145 = vmax.xlane.f32.xlu1 %v144_v57 }
 0x1c2   :  { %v437_v58 = vpop.f32.mrf.mxu0 }
 0x1c3   :  { %v1021_v59 = vadd.f32 %v437_v58, %v1009_v50 }
 0x1c5   :  { %v443_v60 = vsel %vm109_vm0, %v1021_v59, -inf }
 0x1c6   :  { %444 = vmax.xlane.f32.xlu0 %v443_v60 }
 0x21f   :  { %v143_v61 = vpop.xlane.xlu0 %142 }
 0x220   :  { %v147_v62 = vsub.f32 %v136_v52, %v143_v61 }
 0x222   :  { %v149_v63 = vmul.f32 1.442695, %v147_v62 }
 0x224   :  { %746 = vpow2.f32 %v149_v63 }
 0x227   :  { %v146_v0 = vpop.xlane.xlu1 %145 }
 0x228   :  { %v148_v1 = vsub.f32 %v139_v56, %v146_v0 }
 0x22a   :  { %v747_v2 = vpop.eup %746  ;;  %v151_v3 = vmul.f32 1.442695, %v148_v1 }
 0x22b   :  { %v153_v4 = vsel %vm109_vm0, %v747_v2, 0.0 }
 0x22c   :  { %748 = vpow2.f32 %v151_v3  ;;  %154 = vadd.xlane.f32.xlu0 %v153_v4 }
 0x232   :  { %v749_v5 = vpop.eup %748 }
 0x233   :  { %v156_v6 = vsel %vm109_vm0, %v749_v5, 0.0 }
 0x234   :  { %157 = vadd.xlane.f32.xlu1 %v156_v6 }
 0x239   :  { %v445_v8 = vpop.xlane.xlu0 %444 }
 0x23a   :  { %v449_v40 = vsub.f32 %v1021_v59, %v445_v8 }
 0x240   :  { %731 = vrot.lane.b32.xlu0 %v1033_v7, %s813_s12 }
 0x248   :  { %741 = vrot.lane.b32.xlu0 %v1033_v7, %s816_s15 }
 0x24d   :  { %200 = vrot.lane.b32.xlu1 %v961_v35, %s813_s12 }
 0x255   :  { %406 = vrot.lane.b32.xlu1 %v961_v35, %s816_s15  ;;  %s675_s15 = sshll.u32 %s1182_s4, 4  ;;  %s676_s15 = int_to_ptr.hbm [resolvable:$true] %s675_s15 }
 0x29f   :  { %v155_v9 = vpop.xlane.xlu0 %154 }
 0x2a0   :  { %750 = vrcp.f32 %v155_v9 }
 0x2a6   :  { %v751_v10 = vpop.eup %750 }
 0x2a7   :  { %v161_v11 = vmul.f32 %v751_v10, %v155_v9  ;;  %v158_v12 = vpop.xlane.xlu1 %157 }
 0x2a8   :  { %752 = vrcp.f32 %v158_v12 }
 0x2a9   :  { %v163_v13 = vsub.f32 2.0, %v161_v11 }
 0x2ab   :  { %v165_v14 = vmul.f32 %v751_v10, %v163_v13 }
 0x2ad   :  { %v1039_v15 = vmul.f32 %v747_v2, %v165_v14 }
 0x2ae   :  { %v753_v16 = vpop.eup %752 }
 0x2af   :  { %v162_v17 = vmul.f32 %v753_v16, %v158_v12  ;;  %695 = vmatmul.msk.f32.vlgmr.msrb.gmra.mxu2 %vm109_vm0, %v1039_v15 }
 0x2b1   :  { %v164_v18 = vsub.f32 2.0, %v162_v17 }
 0x2b2   :  { %v732_v23 = vpop.permute.xlu0 %731 }
 0x2b3   :  { %v166_v19 = vmul.f32 %v753_v16, %v164_v18  ;;  %v734_v24 = vunpack.i.h.bf16 %v732_v23  ;;  %v733_v25 = vunpack.i.l.bf16 %v732_v23 }
 0x2b5   :  { %v1043_v20 = vmul.f32 %v749_v5, %v166_v19  ;;  %293 = vmatpush.msra.mxu2 %v733_v25 }
 0x2b7   :  { %696 = vmatmul.msk.f32.vlgmr.msra.gmra.mxu3 %vm109_vm0, %v1043_v20  ;;  %294 = vmatpush.msra.mxu2 %v734_v24 }
 0x2b8   :  { %703 = vmatpush.xpose.msk.msra.mxu3 %vm109_vm0, %v992_v42 }
 0x2ba   :  { %v742_v26 = vpop.permute.xlu0 %741 }
 0x2bb   :  { %v743_v27 = vunpack.i.l.bf16 %v742_v26  ;;  %v744_v29 = vunpack.i.h.bf16 %v742_v26 }
 0x2bc   :  { %704 = vmatpush.xpose.msk.msra.mxu3 %vm109_vm0, %v307_v45 }
 0x2bd   :  { %497 = vmatpush.msrb.mxu1 %v743_v27 }
 0x2bf   :  { %v201_v21 = vpop.permute.xlu1 %200  ;;  %699 = vmatmul.msk.f32.vlgmr.msrb.gmra.mxu3 %vm109_vm0, %v995_v43  ;;  %498 = vmatpush.msrb.mxu1 %v744_v29  ;;  %v451_v43 = vmul.f32 1.442695, %v449_v40 }
 0x2c1   :  { %754 = vpow2.f32 %v451_v43 }
 0x2c7   :  { %v407_v22 = vpop.permute.xlu1 %406  ;;  %700 = vmatmul.msk.f32.gmra.mxu3 %vm109_vm0, %v201_v21  ;;  %v755_v49 = vpop.eup %754 }
 0x2c8   :  { %712 = vmatmul.msk.f32.gmra.mxu0 %vm109_vm0, %v407_v22 }
 0x2cf   :  { %705 = vmatmul.msk.f32.vlgmr.msra.gmra.mxu3 %vm109_vm0, %v999_v44 }
 0x2d7   :  { %706 = vmatmul.msk.f32.gmra.mxu3 %vm109_vm0, %v1001_v47 }
 0x33a   :  { %v1058_v30 = vpop.f32.mrf.mxu3 }
 0x342   :  { %v231_v31 = vpop.f32.mrf.mxu3 }
 0x343   :  { %v232_v32 = vadd.f32 %v231_v31, %v1009_v50 }
 0x345   :  { %v237_v34 = vsel %vm109_vm0, %v232_v32, -inf  ;;  %v440_v42 = vpop.f32.mrf.mxu0 }
 0x346   :  { %238 = vmax.xlane.f32.xlu2 %v237_v34  ;;  %v441_v44 = vadd.f32 %v440_v42, %v1016_v54 }
 0x348   :  { %v446_v48 = vsel %vm109_vm0, %v441_v44, -inf }
 0x34a   :  { %v234_v35 = vpop.f32.mrf.mxu3 }
 0x34b   :  { %v235_v36 = vadd.f32 %v234_v35, %v1016_v54 }
 0x34d   :  { %v240_v37 = vsel %vm109_vm0, %v235_v36, -inf }
 0x34e   :  { %241 = vmax.xlane.f32.xlu1 %v240_v37 }
 0x352   :  { %v335_v38 = vpop.f32.mrf.mxu3 }
 0x353   :  { %v336_v39 = vadd.f32 %v335_v38, %v1009_v50  ;;  %v455_v50 = vsel %vm109_vm0, %v755_v49, 0.0 }
 0x355   :  { %v341_v41 = vsel %vm109_vm0, %v336_v39, -inf }
 0x356   :  { %342 = vmax.xlane.f32.xlu2 %v341_v41 }
 0x35a   :  { %v338_v45 = vpop.f32.mrf.mxu3 }
 0x35b   :  { %v339_v46 = vadd.f32 %v338_v45, %v1016_v54 }
 0x35d   :  { %v344_v47 = vsel %vm109_vm0, %v339_v46, -inf }
 0x35e   :  { %345 = vmax.xlane.f32.xlu1 %v344_v47  ;;  %447 = vmax.xlane.f32.xlu2 %v446_v48 }
 0x366   :  { %456 = vadd.xlane.f32.xlu2 %v455_v50 }
 0x3b9   :  { %v239_v51 = vpop.xlane.xlu2 %238 }
 0x3ba   :  { %v243_v52 = vsub.f32 %v232_v32, %v239_v51 }
 0x3bc   :  { %v245_v53 = vmul.f32 1.442695, %v243_v52 }
 0x3be   :  { %756 = vpow2.f32 %v245_v53 }
 0x3c1   :  { %v242_v55 = vpop.xlane.xlu1 %241 }
 0x3c2   :  { %v244_v56 = vsub.f32 %v235_v36, %v242_v55 }
 0x3c4   :  { %v757_v57 = vpop.eup %756  ;;  %v247_v58 = vmul.f32 1.442695, %v244_v56 }
 0x3c5   :  { %v249_v54 = vsel %vm109_vm0, %v757_v57, 0.0 }
 0x3c6   :  { %758 = vpow2.f32 %v247_v58  ;;  %250 = vadd.xlane.f32.xlu1 %v249_v54  ;;  %v192_v58 = vpop.f32.mrf.mxu2 }
 0x3c9   :  { %v343_v59 = vpop.xlane.xlu2 %342 }
 0x3ca   :  { %v347_v60 = vsub.f32 %v336_v39, %v343_v59 }
 0x3cc   :  { %v759_v61 = vpop.eup %758  ;;  %v349_v62 = vmul.f32 1.442695, %v347_v60 }
 0x3cd   :  { %v252_v63 = vsel %vm109_vm0, %v759_v61, 0.0 }
 0x3ce   :  { %760 = vpow2.f32 %v349_v62  ;;  %253 = vadd.xlane.f32.xlu2 %v252_v63  ;;  %v572_v63 = vld [vmem:[%s1180_s2 + $0x38] sm:$0xff] }
 0x3cf   :  { %588 = vmatpush.msrb.mxu3 %v572_v63 }
 0x3d1   :  { %v346_v0 = vpop.xlane.xlu1 %345  ;;  %v448_v1 = vpop.xlane.xlu2 %447 }
 0x3d2   :  { %v348_v2 = vsub.f32 %v339_v46, %v346_v0  ;;  %v450_v5 = vsub.f32 %v441_v44, %v448_v1  ;;  %v571_v0 = vld [vmem:[%s1180_s2 + $0x30] sm:$0xff]  ;;  %v570_v1 = vld [vmem:[%s1180_s2 + $0x28] sm:$0xff] }
 0x3d3   :  { %589 = vmatpush.msrb.mxu3 %v571_v0 }
 0x3d4   :  { %v761_v3 = vpop.eup %760  ;;  %v351_v4 = vmul.f32 1.442695, %v348_v2  ;;  %v453_v8 = vmul.f32 1.442695, %v450_v5  ;;  %v569_v2 = vld [vmem:[%s1180_s2 + $0x20] sm:$0xff]  ;;  %v566_v5 = vld [vmem:[%s1180_s2 + $0x8] sm:$0xff] }
 0x3d5   :  { %v353_v6 = vsel %vm109_vm0, %v761_v3, 0.0  ;;  %590 = vmatpush.msrb.mxu3 %v570_v1 }
 0x3d6   :  { %762 = vpow2.f32 %v351_v4  ;;  %354 = vadd.xlane.f32.xlu1 %v353_v6  ;;  %v567_v4 = vld [vmem:[%s1180_s2 + $0x10] sm:$0xff]  ;;  %v565_v6 = vld [vmem:[%s1180_s2] sm:$0xff] }
 0x3d7   :  { %591 = vmatpush.msrb.mxu3 %v569_v2 }
 0x3d9   :  { %v457_v9 = vpop.xlane.xlu2 %456 }
 0x3da   :  { %764 = vrcp.f32 %v457_v9 }
 0x3db   :  { %766 = vpow2.f32 %v453_v8 }
 0x3dc   :  { %v763_v10 = vpop.eup %762 }
 0x3dd   :  { %v356_v11 = vsel %vm109_vm0, %v763_v10, 0.0 }
 0x3de   :  { %357 = vadd.xlane.f32.xlu1 %v356_v11 }
 0x3e0   :  { %v765_v12 = vpop.eup %764 }
 0x3e1   :  { %v463_v13 = vmul.f32 %v765_v12, %v457_v9  ;;  %v767_v14 = vpop.eup %766 }
 0x3e2   :  { %v458_v18 = vsel %vm109_vm0, %v767_v14, 0.0 }
 0x3e3   :  { %v465_v16 = vsub.f32 2.0, %v463_v13 }
 0x3e5   :  { %v467_v17 = vmul.f32 %v765_v12, %v465_v16 }
 0x3e6   :  { %459 = vadd.xlane.f32.xlu1 %v458_v18  ;;  %736 = vrot.lane.b32.xlu2 %v1033_v7, %s814_s13 }
 0x3e7   :  { %v1079_v19 = vmul.f32 %v755_v49, %v467_v17 }
 0x3e9   :  { %713 = vmatmul.msk.f32.vlgmr.msrb.gmra.mxu1 %vm109_vm0, %v1079_v19 }
 0x439   :  { %v251_v21 = vpop.xlane.xlu1 %250 }
 0x43a   :  { %768 = vrcp.f32 %v251_v21 }
 0x440   :  { %v769_v22 = vpop.eup %768 }
 0x441   :  { %v257_v23 = vmul.f32 %v769_v22, %v251_v21  ;;  %v254_v24 = vpop.xlane.xlu2 %253 }
 0x442   :  { %770 = vrcp.f32 %v254_v24 }
 0x443   :  { %v259_v25 = vsub.f32 2.0, %v257_v23  ;;  %v745_v23 = vld [vmem:[%s1181_s3 + $0x10] ss:$0 sm:$0xff] }
 0x445   :  { %v261_v26 = vmul.f32 %v769_v22, %v259_v25 }
 0x447   :  { %v263_v27 = vmul.f32 %v757_v57, %v261_v26 }
 0x448   :  { %v771_v29 = vpop.eup %770 }
 0x449   :  { %v258_v31 = vmul.f32 %v771_v29, %v254_v24  ;;  %v355_v32 = vpop.xlane.xlu1 %354  ;;  %v737_v34 = vpop.permute.xlu2 %736  ;;  %701 = vmatmul.msk.f32.vlgmr.msra.gmra.mxu2 %vm109_vm0, %v263_v27 }
 0x44a   :  { %772 = vrcp.f32 %v355_v32  ;;  %v738_v7 = vunpack.i.l.bf16 %v737_v34  ;;  %v739_v36 = vunpack.i.h.bf16 %v737_v34 }
 0x44b   :  { %v260_v35 = vsub.f32 2.0, %v258_v31 }
 0x44c   :  { %395 = vmatpush.msrb.mxu2 %v738_v7 }
 0x44d   :  { %v262_v37 = vmul.f32 %v771_v29, %v260_v35 }
 0x44e   :  { %396 = vmatpush.msrb.mxu2 %v739_v36 }
 0x44f   :  { %v1084_v38 = vmul.f32 %v759_v61, %v262_v37 }
 0x450   :  { %v773_v39 = vpop.eup %772 }
 0x451   :  { %v361_v40 = vmul.f32 %v773_v39, %v355_v32  ;;  %v358_v41 = vpop.xlane.xlu1 %357  ;;  %702 = vmatmul.msk.f32.gmra.mxu2 %vm109_vm0, %v1084_v38 }
 0x452   :  { %774 = vrcp.f32 %v358_v41 }
 0x453   :  { %v363_v42 = vsub.f32 2.0, %v361_v40 }
 0x455   :  { %v365_v43 = vmul.f32 %v773_v39, %v363_v42 }
 0x457   :  { %v367_v44 = vmul.f32 %v761_v3, %v365_v43  ;;  %v568_v3 = vld [vmem:[%s1180_s2 + $0x18] sm:$0xff] }
 0x458   :  { %v775_v45 = vpop.eup %774  ;;  %592 = vmatpush.msrb.mxu3 %v568_v3 }
 0x459   :  { %v362_v46 = vmul.f32 %v775_v45, %v358_v41  ;;  %v460_v47 = vpop.xlane.xlu1 %459  ;;  %707 = vmatmul.msk.f32.vlgmr.msrb.gmra.mxu2 %vm109_vm0, %v367_v44 }
 0x45a   :  { %776 = vrcp.f32 %v460_v47  ;;  %593 = vmatpush.msrb.mxu3 %v567_v4 }
 0x45b   :  { %v364_v48 = vsub.f32 2.0, %v362_v46 }
 0x45c   :  { %594 = vmatpush.msrb.mxu3 %v566_v5 }
 0x45d   :  { %v366_v49 = vmul.f32 %v775_v45, %v364_v48 }
 0x45e   :  { %595 = vmatpush.msrb.mxu3 %v565_v6 }
 0x45f   :  { %v1089_v50 = vmul.f32 %v763_v10, %v366_v49 }
 0x460   :  { %v777_v51 = vpop.eup %776 }
 0x461   :  { %v464_v52 = vmul.f32 %v777_v51, %v460_v47  ;;  %708 = vmatmul.msk.f32.gmra.mxu2 %vm109_vm0, %v1089_v50 }
 0x463   :  { %v466_v53 = vsub.f32 2.0, %v464_v52 }
 0x465   :  { %v468_v55 = vmul.f32 %v777_v51, %v466_v53 }
 0x466   :  { %v500_v56 = vpop.f32.mrf.mxu1 }
 0x467   :  { %553 = vrot.lane.b32.xlu0 %v500_v56, %s810_s11  ;;  %v1094_v57 = vmul.f32 %v767_v14, %v468_v55 }
 0x469   :  { %714 = vmatmul.msk.f32.gmra.mxu1 %vm109_vm0, %v1094_v57 }
 0x4cc   :  { %v296_v54 = vpop.f32.mrf.mxu2 }
 0x4cd   :  { %537 = vrot.lane.b32.xlu1 %v296_v54, %s815_s14 }
 0x4d4   :  { %v299_v59 = vpop.f32.mrf.mxu2 }
 0x4d5   :  { %539 = vrot.lane.b32.xlu2 %v299_v59, %s815_s14 }
 0x4d9   :  { %v554_v8 = vpop.permute.xlu0 %553 }
 0x4dc   :  { %v398_v60 = vpop.f32.mrf.mxu2 }
 0x4dd   :  { %545 = vrot.lane.b32.xlu0 %v398_v60, %s812_s0 }
 0x4e4   :  { %v401_v61 = vpop.f32.mrf.mxu2 }
 0x4e5   :  { %547 = vrot.lane.b32.xlu0 %v401_v61, %s812_s0 }
 0x4e6   :  { %v503_v62 = vpop.f32.mrf.mxu1 }
 0x4e7   :  { %555 = vrot.lane.b32.xlu2 %v503_v62, %s810_s11 }
 0x4ef   :  { %506 = vrot.lane.b32.xlu2 %v263_v27, %s815_s14 }
 0x4f7   :  { %512 = vrot.lane.b32.xlu2 %v367_v44, %s812_s0 }
 0x52f   :  { %v540_v12 = vpop.permute.xlu2 %539 }
 0x530   :  { %v560_v16 = vsel %vm109_vm0, %v1058_v30, %v540_v12 }
 0x53f   :  { %v538_v9 = vpop.permute.xlu1 %537 }
 0x540   :  { %v559_v10 = vsel %vm109_vm0, %v192_v58, %v538_v9 }
 0x541   :  { %v556_v18 = vpop.permute.xlu2 %555 }
 0x549   :  { %v507_v48 = vpop.permute.xlu2 %506 }
 0x54f   :  { %v546_v11 = vpop.permute.xlu0 %545 }
 0x550   :  { %v561_v13 = vsel %vm526_vm1, %v559_v10, %v546_v11 }
 0x551   :  { %v563_v14 = vsel %vm529_vm2, %v561_v13, %v554_v8 }
 0x552   :  { %715 = vmatmul.msk.f32.vlgmr.msrb.gmra.mxu3 %vm532_vm3, %v563_v14 }
 0x557   :  { %v548_v17 = vpop.permute.xlu0 %547 }
 0x558   :  { %v562_v21 = vsel %vm526_vm1, %v560_v16, %v548_v17  ;;  %v524_v17 = vsel %vm109_vm0, %v1039_v15, %v507_v48 }
 0x559   :  { %v564_v22 = vsel %vm529_vm2, %v562_v21, %v556_v18 }
 0x55a   :  { %716 = vmatmul.msk.f32.gmra.mxu3 %vm532_vm3, %v564_v22 }
 0x5d5   :  { %v597_v24 = vpop.f32.mrf.mxu3 }
 0x5d6   :  { %v598_v25 = vadd.f32 %v745_v23, %v597_v24 }
 0x5d8   :  { %v603_v26 = vadd.f32 %v598_v25, %v938_v28  ;;  %v817_v28 = vmov 32.0  }
 0x5d9   :  { %778 = vrcp.f32 %v817_v28 }
 0x5da   :  { %v605_v27 = vsel %vm526_vm1, %v603_v26, 0.0 }
 0x5db   :  { %606 = vadd.xlane.f32.xlu1 %v605_v27 }
 0x5dd   :  { %v600_v30 = vpop.f32.mrf.mxu3 }
 0x5de   :  { %v601_v29 = vadd.f32 %v745_v23, %v600_v30 }
 0x5df   :  { %v779_v34 = vpop.eup %778 }
 0x5e0   :  { %v604_v31 = vadd.f32 %v601_v29, %v956_v33  ;;  %v612_v7 = vmul.f32 32.0, %v779_v34  ;;  %vm616_vm4 = vweird.f32 %v779_v34 }
 0x5e2   :  { %v608_v32 = vsel %vm526_vm1, %v604_v31, 0.0  ;;  %v613_v35 = vsub.f32 1.0, %v612_v7 }
 0x5e3   :  { %609 = vadd.xlane.f32.xlu0 %v608_v32 }
 0x5e4   :  { %v614_v36 = vmul.f32 %v779_v34, %v613_v35 }
 0x5e6   :  { %v615_v33 = vadd.f32 %v779_v34, %v614_v36 }
 0x5e8   :  { %v617_v37 = vsel %vm616_vm4, %v779_v34, %v615_v33 }
 0x5f4   :  { %508 = vrot.lane.b32.xlu1 %v1084_v38, %s815_s14 }
 0x5f7   :  { %657 = vrot.lane.b32.xlu0 %v745_v23, %s814_s13 }
 0x5ff   :  { %662 = vrot.lane.b32.xlu0 %v745_v23, %s811_s1  ;;  %s818_s1 = smov [#allocation2]  }
 0x607   :  { %514 = vrot.lane.b32.xlu0 %v1089_v50, %s812_s0  ;;  %v513_v50 = vpop.permute.xlu2 %512  ;;  %s673_s0 = sshll.u32 %s818_s1, 4  ;;  %s674_s0 = int_to_ptr.vmem [resolvable:$true] %s673_s0 }
 0x608   :  { %v527_v21 = vsel %vm526_vm1, %v524_v17, %v513_v50 }
 0x64e   :  { %v607_v39 = vpop.xlane.xlu1 %606 }
 0x64f   :  { %v618_v40 = vmul.f32 %v617_v37, %v607_v39 }
 0x651   :  { %v620_v41 = vsub.f32 %v603_v26, %v618_v40 }
 0x653   :  { %v622_v38 = vmul.f32 %v620_v41, %v620_v41 }
 0x655   :  { %v624_v42 = vsel %vm526_vm1, %v622_v38, 0.0 }
 0x656   :  { %625 = vadd.xlane.f32.xlu2 %v624_v42  ;;  %v610_v43 = vpop.xlane.xlu0 %609 }
 0x657   :  { %v619_v44 = vmul.f32 %v617_v37, %v610_v43 }
 0x659   :  { %v621_v45 = vsub.f32 %v604_v31, %v619_v44 }
 0x65b   :  { %v623_v46 = vmul.f32 %v621_v45, %v621_v45 }
 0x65d   :  { %v627_v47 = vsel %vm526_vm1, %v623_v46, 0.0 }
 0x65e   :  { %628 = vadd.xlane.f32.xlu1 %v627_v47 }
 0x666   :  { %v509_v52 = vpop.permute.xlu1 %508 }
 0x667   :  { %v525_v54 = vsel %vm109_vm0, %v1043_v20, %v509_v52 }
 0x669   :  { %v658_v49 = vpop.permute.xlu0 %657 }
 0x66e   :  { %520 = vrot.lane.b32.xlu2 %v1094_v57, %s810_s11 }
 0x671   :  { %v663_v51 = vpop.permute.xlu0 %662 }
 0x677   :  { %518 = vrot.lane.b32.xlu1 %v1079_v19, %s810_s11 }
 0x679   :  { %v515_v58 = vpop.permute.xlu0 %514 }
 0x67a   :  { %v528_v59 = vsel %vm526_vm1, %v525_v54, %v515_v58 }
 0x6c9   :  { %v626_v53 = vpop.xlane.xlu2 %625 }
 0x6ca   :  { %v630_v55 = vmul.f32 %v626_v53, %v617_v37 }
 0x6cc   :  { %v632_v56 = vadd.f32 1e-05, %v630_v55 }
 0x6ce   :  { %780 = vrsqrt.f32 %v632_v56  ;;  %vm640_vm6 = vweird.f32 %v632_v56 }
 0x6d1   :  { %v521_v60 = vpop.permute.xlu2 %520  ;;  %v629_v57 = vpop.xlane.xlu1 %628 }
 0x6d2   :  { %v531_v61 = vsel %vm529_vm2, %v528_v59, %v521_v60  ;;  %v631_v19 = vmul.f32 %v629_v57, %v617_v37 }
 0x6d3   :  { %534 = vst.msk [vmem:[%s1183_s5 + $0x8] sm:$0xff] %vm532_vm3, %v531_v61 }
 0x6d4   :  { %v781_v62 = vpop.eup %780  ;;  %v633_v63 = vadd.f32 1e-05, %v631_v19 }
 0x6d5   :  { %v635_v0 = vmul.f32 %v781_v62, %v632_v56  ;;  %vm641_vm5 = vweird.f32 %v781_v62 }
 0x6d6   :  { %782 = vrsqrt.f32 %v633_v63  ;;  %vm642_vm7 = vmor %vm640_vm6, %vm641_vm5  ;;  %vm650_vm9 = vweird.f32 %v633_v63 }
 0x6d7   :  { %v636_v1 = vmul.f32 %v781_v62, %v635_v0 }
 0x6d9   :  { %v637_v2 = vmul.f32 0.5, %v636_v1 }
 0x6db   :  { %v638_v3 = vsub.f32 1.5, %v637_v2 }
 0x6dc   :  { %v783_v20 = vpop.eup %782 }
 0x6dd   :  { %v639_v4 = vmul.f32 %v781_v62, %v638_v3  ;;  %v645_v5 = vmul.f32 %v783_v20, %v633_v63  ;;  %vm651_vm8 = vweird.f32 %v783_v20 }
 0x6de   :  { %vm652_vm10 = vmor %vm650_vm9, %vm651_vm8 }
 0x6df   :  { %v643_v6 = vsel %vm642_vm7, %v781_v62, %v639_v4  ;;  %v646_v8 = vmul.f32 %v783_v20, %v645_v5 }
 0x6e0   :  { %v654_v9 = vmul.f32 %v643_v6, %v620_v41 }
 0x6e1   :  { %v647_v10 = vmul.f32 0.5, %v646_v8 }
 0x6e2   :  { %v660_v11 = vmul.f32 %v658_v49, %v654_v9 }
 0x6e3   :  { %v648_v12 = vsub.f32 1.5, %v647_v10 }
 0x6e4   :  { %v665_v13 = vadd.f32 %v663_v51, %v660_v11 }
 0x6e5   :  { %v649_v14 = vmul.f32 %v783_v20, %v648_v12 }
 0x6e6   :  { %667 = vst.msk [vmem:[#allocation2] sm:$0xff] %vm526_vm1, %v665_v13 }
 0x6e7   :  { %v653_v16 = vsel %vm652_vm10, %v783_v20, %v649_v14 }
 0x6e8   :  { %v655_v18 = vmul.f32 %v653_v16, %v621_v45 }
 0x6e9   :  { %v519_v22 = vpop.permute.xlu1 %518 }
 0x6ea   :  { %v661_v23 = vmul.f32 %v658_v49, %v655_v18  ;;  %v530_v24 = vsel %vm529_vm2, %v527_v21, %v519_v22 }
 0x6eb   :  { %533 = vst.msk [vmem:[%s1183_s5] sm:$0xff] %vm532_vm3, %v530_v24 }
 0x6ec   :  { %v666_v15 = vadd.f32 %v663_v51, %v661_v23 }
 0x6ee   :  { %668 = vst.msk [vmem:[#allocation2 + $0x8] sm:$0xff] %vm526_vm1, %v666_v15 }
 0x6ef   :  { %681 = dma.vmem_to_hbm [thread:$0]  %s674_s0, 256, %s676_s15, [#allocation3], %s819_s18, %s819_s18, %s820_s19  }
 0x6f0   :  { %808 = dma.done.wait [#allocation3], 256  }
 0x6f1   :  { %809 = vsyncadd [#allocation3], 4294967040 }
 0x6f2   :  { %690 = vsyncpa [#allocation3], 1 }

</bundles_post_ra>
